<compile_context>
chip_gen: v5e
topology: v5e:2x2
jax: 0.10.0
libtpu: 0.0.40
codegen_flags: <defaults>
</compile_context>

<pallas_src>
import functools
import math

import jax
import jax.numpy as jnp
from jax import lax
from jax.experimental import pallas as pl
from jax.experimental.pallas import tpu as pltpu


_DEFAULT_TM = 256                    # token tile (512 is better on v5e/v6e; 256 keeps v7x grids even)
_DEFAULT_TK = 512                    # contraction tile for large Din (patch embed / FF2)
_VMEM_LIMIT = 48 * 1024 * 1024       # below v7x's 64 MiB physical VMEM


def _gelu(x):
    # TODO(synk): nn.GELU uses the exact erf form; the tanh approximation is used
    # here (max abs deviation ~3e-3) since erf lowering is not guaranteed in Mosaic.
    return jax.nn.gelu(x, approximate=True)


# ----------------------------------------------------------------------------
# Kernel bodies
# ----------------------------------------------------------------------------
def _ln_linear_kernel(x_ref, g_ref, b_ref, w_ref, bias_ref, o_ref, *, eps, activation):
    """out = act(LayerNorm(x) @ w + bias) for one [TM, D] token tile (bf16 in/out)."""
    x = x_ref[...].astype(jnp.float32)                       # [TM, D] f32 stats
    mean = jnp.mean(x, axis=-1, keepdims=True)
    xc = x - mean
    var = jnp.mean(xc * xc, axis=-1, keepdims=True)
    inv = lax.rsqrt(var + eps)                                # EUP slot
    # Fold gamma into the rsqrt multiplier -> single broadcast multiply + add.
    y = xc * (inv * g_ref[...].astype(jnp.float32)) + b_ref[...].astype(jnp.float32)
    acc = jnp.dot(y.astype(jnp.bfloat16), w_ref[...],         # bf16 MXU, f32 acc
                  preferred_element_type=jnp.float32)
    acc = acc + bias_ref[...].astype(jnp.float32)
    if activation == "gelu":
        acc = _gelu(acc)
    o_ref[...] = acc.astype(o_ref.dtype)


def _linear_kernel(x_ref, w_ref, bias_ref, *rest, activation, nk, has_residual):
    """K-tiled act(x @ w + bias [+ residual]); f32 VMEM accumulator across k."""
    if has_residual:
        res_ref, o_ref, acc_ref = rest
    else:
        o_ref, acc_ref = rest
        res_ref = None
    k = pl.program_id(1)

    @pl.when(k == 0)
    def _():
        acc_ref[...] = jnp.zeros_like(acc_ref)

    acc_ref[...] += jnp.dot(x_ref[...].astype(jnp.bfloat16), w_ref[...],
                            preferred_element_type=jnp.float32)

    @pl.when(k == nk - 1)
    def _():
        acc = acc_ref[...] + bias_ref[...].astype(jnp.float32)
        if activation == "gelu":
            acc = _gelu(acc)
        if res_ref is not None:
            acc = acc + res_ref[...].astype(jnp.float32)
        o_ref[...] = acc.astype(o_ref.dtype)


def _attention_kernel(qkv_ref, o_ref, *, heads, dim_head, scale):
    """softmax(q k^T * scale) @ v for ALL heads of one batch element.

    qkv_ref block: [1, N, 3*inner] in the fused-qkv 'n (h d)' column layout,
    so no HBM head transposes are needed.  Heads are split with static lane
    slices; matmuls run on bf16 operands with f32 accumulation; softmax stats
    are f32 and the normalization uses the EUP reciprocal.
    """
    inner = heads * dim_head
    qkv = qkv_ref[0]                                          # [N, 3*inner] bf16
    outs = []
    for h in range(heads):                                    # static unroll
        q = qkv[:, h * dim_head:(h + 1) * dim_head]           # [N, dh] bf16
        k = qkv[:, inner + h * dim_head: inner + (h + 1) * dim_head]
        v = qkv[:, 2 * inner + h * dim_head: 2 * inner + (h + 1) * dim_head]
        dots = lax.dot_general(q, k, (((1,), (1,)), ((), ())),        # q @ k^T
                               preferred_element_type=jnp.float32) * scale
        dots = dots - jnp.max(dots, axis=-1, keepdims=True)
        p = jnp.exp(dots)
        p = p * pl.reciprocal(jnp.sum(p, axis=-1, keepdims=True), approx=True)
        outs.append(jnp.dot(p.astype(jnp.bfloat16), v,                 # p @ v
                            preferred_element_type=jnp.float32))
    out = jnp.concatenate(outs, axis=-1)                       # [N, inner] f32
    o_ref[0] = out.astype(o_ref.dtype)


# ----------------------------------------------------------------------------
# pallas_call wrappers
# ----------------------------------------------------------------------------
def _grid_m(M, tm):
    """Token tile + padded row count so the grid divides evenly."""
    if M <= tm:
        return M, M                      # single full block (full-dim exception)
    Mp = ((M + tm - 1) // tm) * tm
    return tm, Mp


def _pick_tk(Din, tk):
    """Contraction tile: only K-tile when Din is large and divides cleanly."""
    for t in (tk, 256, 128):
        if Din > t and Din % t == 0:
            return t
    return Din


def _pad_rows(x2d, Mp):
    M = x2d.shape[0]
    return x2d if Mp == M else jnp.pad(x2d, ((0, Mp - M), (0, 0)))


def _mm_compiler_params(semantics):
    return pltpu.CompilerParams(dimension_semantics=semantics,
                                vmem_limit_bytes=_VMEM_LIMIT)


def fused_layernorm_linear(x2d, gamma, beta, w_bf16, bias=None, *, eps=1e-5,
                           activation=None, tm=_DEFAULT_TM, out_dtype=jnp.bfloat16):
    """act(LayerNorm(x2d) @ w + bias).  x2d: [M, D] (bf16), w: [D, Dout] (bf16)."""
    M, D = x2d.shape
    Dout = w_bf16.shape[1]
    if bias is None:
        bias = jnp.zeros((Dout,), jnp.float32)
    TM, Mp = _grid_m(M, tm)
    xp = _pad_rows(x2d, Mp)
    out = pl.pallas_call(
        functools.partial(_ln_linear_kernel, eps=eps, activation=activation),
        out_shape=jax.ShapeDtypeStruct((Mp, Dout), out_dtype),
        grid=(Mp // TM,),
        in_specs=[
            pl.BlockSpec((TM, D), lambda i: (i, 0)),        # streamed token tile
            pl.BlockSpec((1, D), lambda i: (0, 0)),         # resident gamma
            pl.BlockSpec((1, D), lambda i: (0, 0)),         # resident beta
            pl.BlockSpec((D, Dout), lambda i: (0, 0)),      # resident bf16 weight
            pl.BlockSpec((1, Dout), lambda i: (0, 0)),      # resident bias
        ],
        out_specs=pl.BlockSpec((TM, Dout), lambda i: (i, 0)),
        compiler_params=_mm_compiler_params(("parallel",)),
    )(xp, gamma.reshape(1, D), beta.reshape(1, D), w_bf16, bias.reshape(1, Dout))
    return out[:M] if Mp != M else out


def linear_pallas(x2d, w_bf16, bias, *, activation=None, residual=None,
                  tm=_DEFAULT_TM, tk=_DEFAULT_TK, out_dtype=jnp.bfloat16):
    """act(x2d @ w + bias [+ residual]) with a K-tiled reduction grid axis."""
    M, Din = x2d.shape
    Dout = w_bf16.shape[1]
    TM, Mp = _grid_m(M, tm)
    TK = _pick_tk(Din, tk)
    nk = Din // TK
    xp = _pad_rows(x2d, Mp)
    has_residual = residual is not None

    in_specs = [
        pl.BlockSpec((TM, TK), lambda i, k: (i, k)),        # streamed x tile
        pl.BlockSpec((TK, Dout), lambda i, k: (k, 0)),      # streamed/resident weight
        pl.BlockSpec((1, Dout), lambda i, k: (0, 0)),       # resident bias
    ]
    args = [xp, w_bf16, bias.reshape(1, Dout)]
    if has_residual:
        in_specs.append(pl.BlockSpec((TM, Dout), lambda i, k: (i, 0)))  # fused residual
        args.append(_pad_rows(residual, Mp))

    out = pl.pallas_call(
        functools.partial(_linear_kernel, activation=activation, nk=nk,
                          has_residual=has_residual),
        out_shape=jax.ShapeDtypeStruct((Mp, Dout), out_dtype),
        grid=(Mp // TM, nk),
        in_specs=in_specs,
        out_specs=pl.BlockSpec((TM, Dout), lambda i, k: (i, 0)),
        scratch_shapes=[pltpu.VMEM((TM, Dout), jnp.float32)],
        compiler_params=_mm_compiler_params(("parallel", "arbitrary")),
    )(*args)
    return out[:M] if Mp != M else out


def attention_pallas(qkv, heads, dim_head, scale, out_dtype=jnp.bfloat16):
    """qkv: [B, N, 3*inner] in 'n (h d)' layout -> attention output [B, N, inner]."""
    B, N, three_inner = qkv.shape
    inner = heads * dim_head
    return pl.pallas_call(
        functools.partial(_attention_kernel, heads=heads, dim_head=dim_head,
                          scale=scale),
        out_shape=jax.ShapeDtypeStruct((B, N, inner), out_dtype),
        grid=(B,),
        in_specs=[pl.BlockSpec((1, N, three_inner), lambda b: (b, 0, 0))],
        out_specs=pl.BlockSpec((1, N, inner), lambda b: (b, 0, 0)),
        compiler_params=_mm_compiler_params(("parallel",)),
    )(qkv)


# ----------------------------------------------------------------------------
# ViT module (mirrors the PyTorch spec; dropout p=0 -> identity)
# ----------------------------------------------------------------------------
def _pair(t):
    return t if isinstance(t, tuple) else (t, t)


class ViTPallas:
    def __init__(self, *, image_size, patch_size, dim, depth, heads, mlp_dim,
                 pool="cls", channels=512, dim_head=64, key=None):
        ih, iw = _pair(image_size)
        ph, pw = _pair(patch_size)
        assert ih % ph == 0 and iw % pw == 0, "Image dims must divide patch size."
        assert pool in {"cls", "mean"}
        num_patches = (ih // ph) * (iw // pw)
        patch_dim = channels * ph * pw
        inner_dim = dim_head * heads

        self.patch_hw = (ph, pw)
        self.dim = dim
        self.heads = heads
        self.dim_head = dim_head
        self.scale = dim_head ** (-0.5)
        self.pool = pool
        self.project_out = not (heads == 1 and dim_head == dim)

        key = jax.random.PRNGKey(0) if key is None else key
        ks = iter(jax.random.split(key, 8 + 8 * depth))

        def dense(k, fan_in, fan_out):
            # torch nn.Linear default init: U(-1/sqrt(fan_in), 1/sqrt(fan_in))
            bound = 1.0 / math.sqrt(fan_in)
            kw, kb = jax.random.split(k)
            w = jax.random.uniform(kw, (fan_in, fan_out), jnp.float32, -bound, bound)
            b = jax.random.uniform(kb, (fan_out,), jnp.float32, -bound, bound)
            return w, b

        self.patch_w, self.patch_b = dense(next(ks), patch_dim, dim)
        self.patch_w_bf16 = self.patch_w.astype(jnp.bfloat16)     # pre-cast once
        self.pos_embedding = jax.random.normal(next(ks), (1, num_patches + 1, dim),
                                               jnp.float32)
        self.cls_token = jax.random.normal(next(ks), (1, 1, dim), jnp.float32)

        self.layers = []
        for _ in range(depth):
            w_qkv, _ = dense(next(ks), dim, inner_dim * 3)            # to_qkv: bias=False
            w_out, b_out = dense(next(ks), inner_dim, dim)
            w1, b1 = dense(next(ks), dim, mlp_dim)
            w2, b2 = dense(next(ks), mlp_dim, dim)
            self.layers.append(dict(
                attn_g=jnp.ones((dim,), jnp.float32),
                attn_b=jnp.zeros((dim,), jnp.float32),
                w_qkv=w_qkv, w_out=w_out, b_out=b_out,
                ff_g=jnp.ones((dim,), jnp.float32),
                ff_b=jnp.zeros((dim,), jnp.float32),
                w1=w1, b1=b1, w2=w2, b2=b2,
                # pre-cast bf16 weights used by the Pallas forward
                w_qkv_bf16=w_qkv.astype(jnp.bfloat16),
                w_out_bf16=w_out.astype(jnp.bfloat16),
                w1_bf16=w1.astype(jnp.bfloat16),
                w2_bf16=w2.astype(jnp.bfloat16),
                b_qkv=jnp.zeros((inner_dim * 3,), jnp.float32),
            ))

    # --- full forward -----------------------------------------------------
    def __call__(self, img):
        B, C, H, W = img.shape
        ph, pw = self.patch_hw
        gh, gw = H // ph, W // pw
        inner = self.heads * self.dim_head

        # Rearrange 'b c (h p1) (w p2) -> b (h w) (p1 p2 c)' + bf16 cast (one XLA pass)
        x = img.reshape(B, C, gh, ph, gw, pw).transpose(0, 2, 4, 3, 5, 1)
        x = x.reshape(B * gh * gw, ph * pw * C).astype(jnp.bfloat16)
        # Patch embedding (K-tiled contraction for the large patch_dim case)
        x = linear_pallas(x, self.patch_w_bf16, self.patch_b)
        x = x.reshape(B, gh * gw, self.dim)

        cls = jnp.broadcast_to(self.cls_token, (B, 1, self.dim))
        x = jnp.concatenate([cls, x.astype(jnp.float32)], axis=1)
        x = x + self.pos_embedding[:, : x.shape[1]]
        # emb_dropout / dropout: identity at inference (p = 0)
        x = x.astype(jnp.bfloat16)

        # Pad the flattened token axis ONCE and keep it padded across all layers.
        Nseq = x.shape[1]
        M = B * Nseq
        _, Mp = _grid_m(M, _DEFAULT_TM)
        x_flat = _pad_rows(x.reshape(M, self.dim), Mp)

        for p in self.layers:
            # PreNorm + to_qkv (bias=False), fused; qkv stays in 'n (h d)' layout
            qkv = fused_layernorm_linear(x_flat, p["attn_g"], p["attn_b"],
                                         p["w_qkv_bf16"], p["b_qkv"])
            qkv = (qkv[:M] if Mp != M else qkv).reshape(B, Nseq, 3 * inner)
            attn = attention_pallas(qkv, self.heads, self.dim_head, self.scale)
            attn_flat = _pad_rows(attn.reshape(M, inner), Mp)
            if self.project_out:
                # Output projection with the residual add fused into the kernel.
                x_flat = linear_pallas(attn_flat, p["w_out_bf16"], p["b_out"],
                                       residual=x_flat)
            else:
                x_flat = (attn_flat.astype(jnp.float32)
                          + x_flat.astype(jnp.float32)).astype(jnp.bfloat16)

            # PreNorm + FF1 + GELU fused, then FF2 with fused residual add.
            h = fused_layernorm_linear(x_flat, p["ff_g"], p["ff_b"],
                                       p["w1_bf16"], p["b1"], activation="gelu")
            x_flat = linear_pallas(h, p["w2_bf16"], p["b2"], residual=x_flat)

        x = (x_flat[:M] if Mp != M else x_flat).reshape(B, Nseq, self.dim)
        if self.pool == "mean":
            return jnp.mean(x.astype(jnp.float32), axis=1)
        return x[:, 0].astype(jnp.float32)                     # to_latent = Identity


# ----------------------------------------------------------------------------
# Pure-JAX f32 reference (mirrors the PyTorch forward) for self-check
# ----------------------------------------------------------------------------
def _reference_forward(model, img):
    def layernorm(x, g, b, eps=1e-5):
        mu = jnp.mean(x, axis=-1, keepdims=True)
        var = jnp.mean((x - mu) ** 2, axis=-1, keepdims=True)
        return (x - mu) / jnp.sqrt(var + eps) * g + b

    B, C, H, W = img.shape
    ph, pw = model.patch_hw
    gh, gw = H // ph, W // pw
    Hh, dh = model.heads, model.dim_head

    x = img.reshape(B, C, gh, ph, gw, pw).transpose(0, 2, 4, 3, 5, 1)
    x = x.reshape(B, gh * gw, ph * pw * C) @ model.patch_w + model.patch_b
    cls = jnp.broadcast_to(model.cls_token, (B, 1, model.dim))
    x = jnp.concatenate([cls, x], axis=1)
    x = x + model.pos_embedding[:, : x.shape[1]]

    for p in model.layers:
        y = layernorm(x, p["attn_g"], p["attn_b"])
        q, k, v = jnp.split(y @ p["w_qkv"], 3, axis=-1)
        q, k, v = (t.reshape(B, -1, Hh, dh).transpose(0, 2, 1, 3) for t in (q, k, v))
        dots = jnp.einsum("bhid,bhjd->bhij", q, k) * model.scale
        attn = jax.nn.softmax(dots, axis=-1)
        o = jnp.einsum("bhij,bhjd->bhid", attn, v)
        o = o.transpose(0, 2, 1, 3).reshape(B, -1, Hh * dh)
        if model.project_out:
            o = o @ p["w_out"] + p["b_out"]
        x = o + x
        y = layernorm(x, p["ff_g"], p["ff_b"])
        h = jax.nn.gelu(y @ p["w1"] + p["b1"], approximate=True)
        x = h @ p["w2"] + p["b2"] + x

    return jnp.mean(x, axis=1) if model.pool == "mean" else x[:, 0]


if __name__ == "__main__":
    key = jax.random.PRNGKey(0)
    k_img, k_model = jax.random.split(key)

    # Small but structurally faithful ViT: 16x16 image, 8x8 patches -> 4 patches (+cls),
    # 4 channels, dim=32, 2 layers, 2 heads of 16, mlp_dim=64, cls pooling.
    model = ViTPallas(image_size=16, patch_size=8, dim=32, depth=2, heads=2,
                      mlp_dim=64, pool="cls", channels=4, dim_head=16, key=k_model)

    img = jax.random.normal(k_img, (2, 4, 16, 16), jnp.float32)

    out = jax.block_until_ready(model(img))
    assert out.shape == (2, 32)
    assert bool(jnp.isfinite(out).all())

    ref = _reference_forward(model, img)
    err_max = float(jnp.max(jnp.abs(out - ref)))
    err_mean = float(jnp.mean(jnp.abs(out - ref)))
    # bf16 weights + bf16 activation streaming vs f32 reference: expect ~1e-2 drift;
    # real bugs would be O(1) on most elements (caught by the mean check).
    assert err_max < 1.5e-1 and err_mean < 4e-2, \
        f"mismatch vs reference: max={err_max}, mean={err_mean}"

    print("KERNEL_OK")
</pallas_src>

<mosaic_0001>
module attributes {stable_mosaic.version = 11 : i64} {
  func.func @_linear_kernel(%arg0: i32, %arg1: i32, %arg2: memref<8x128xbf16, #tpu.memory_space<vmem>>, %arg3: memref<128x32xbf16, #tpu.memory_space<vmem>>, %arg4: memref<1x32xf32, #tpu.memory_space<vmem>>, %arg5: memref<8x32xbf16, #tpu.memory_space<vmem>>, %arg6: memref<8x32xf32, #tpu.memory_space<vmem>>) attributes {dimension_semantics = [#tpu.dimension_semantics<parallel>, #tpu.dimension_semantics<arbitrary>], iteration_bounds = array<i64: 1, 2>, scalar_prefetch = 0 : i64, scratch_operands = 1 : i64, tpu.core_type = #tpu.core_type<tc>, window_params = [{transform_indices = @transform_0, window_bounds = array<i64: 8, 128>}, {transform_indices = @transform_1, window_bounds = array<i64: 128, 32>}, {pipeline_mode = #tpu.pipeline_mode<synchronous>, transform_indices = @transform_2, window_bounds = array<i64: 1, 32>}, {transform_indices = @transform_3, window_bounds = array<i64: 8, 32>}]} {
    %c0_i32 = arith.constant 0 : i32
    %0 = arith.cmpi eq, %arg1, %c0_i32 : i32
    %1 = arith.extui %0 : i1 to i32
    %c0_i32_0 = arith.constant 0 : i32
    %2 = arith.cmpi ne, %1, %c0_i32_0 : i32
    scf.if %2 {
      %cst_9 = arith.constant 0.000000e+00 : f32
      %12 = vector.broadcast %cst_9 : f32 to vector<8x32xf32>
      %c0_10 = arith.constant 0 : index
      %c0_11 = arith.constant 0 : index
      %13 = vector.load %arg6[%c0_10, %c0_11] : memref<8x32xf32, #tpu.memory_space<vmem>>, vector<8x32xf32>
      tpu.vector_store %arg6[%c0_10, %c0_11], %12 {strides = array<i32>} : memref<8x32xf32, #tpu.memory_space<vmem>>, vector<8x32xf32>,
    } else {
    }
    %c0 = arith.constant 0 : index
    %c0_1 = arith.constant 0 : index
    %3 = vector.load %arg6[%c0, %c0_1] : memref<8x32xf32, #tpu.memory_space<vmem>>, vector<8x32xf32>
    %c0_2 = arith.constant 0 : index
    %c0_3 = arith.constant 0 : index
    %4 = vector.load %arg2[%c0_2, %c0_3] : memref<8x128xbf16, #tpu.memory_space<vmem>>, vector<8x128xbf16>
    %c0_4 = arith.constant 0 : index
    %c0_5 = arith.constant 0 : index
    %5 = vector.load %arg3[%c0_4, %c0_5] : memref<128x32xbf16, #tpu.memory_space<vmem>>, vector<128x32xbf16>
    %cst = arith.constant dense<0.000000e+00> : vector<8x32xf32>
    %6 = tpu.matmul %4, %5, %cst {dimension_numbers = #tpu.dot_dimension_numbers<[1], [0], [0], [1], [0, 0, 1, 1], [], []>} : vector<8x128xbf16>, vector<128x32xbf16>, vector<8x32xf32> -> vector<8x32xf32>
    %7 = arith.addf %3, %6 : vector<8x32xf32>
    %c0_6 = arith.constant 0 : index
    %c0_7 = arith.constant 0 : index
    %8 = vector.load %arg6[%c0_6, %c0_7] : memref<8x32xf32, #tpu.memory_space<vmem>>, vector<8x32xf32>
    tpu.vector_store %arg6[%c0_6, %c0_7], %7 {strides = array<i32>} : memref<8x32xf32, #tpu.memory_space<vmem>>, vector<8x32xf32>,
    %c1_i32 = arith.constant 1 : i32
    %9 = arith.cmpi eq, %arg1, %c1_i32 : i32
    %10 = arith.extui %9 : i1 to i32
    %c0_i32_8 = arith.constant 0 : i32
    %11 = arith.cmpi ne, %10, %c0_i32_8 : i32
    scf.if %11 {
      %c0_9 = arith.constant 0 : index
      %c0_10 = arith.constant 0 : index
      %12 = vector.load %arg6[%c0_9, %c0_10] : memref<8x32xf32, #tpu.memory_space<vmem>>, vector<8x32xf32>
      %c0_11 = arith.constant 0 : index
      %c0_12 = arith.constant 0 : index
      %13 = vector.load %arg4[%c0_11, %c0_12] : memref<1x32xf32, #tpu.memory_space<vmem>>, vector<1x32xf32>
      %14 = vector.broadcast %13 : vector<1x32xf32> to vector<8x32xf32>
      %15 = arith.addf %12, %14 : vector<8x32xf32>
      %16 = arith.truncf %15 : vector<8x32xf32> to vector<8x32xbf16>
      %c0_13 = arith.constant 0 : index
      %c0_14 = arith.constant 0 : index
      %17 = vector.load %arg5[%c0_13, %c0_14] : memref<8x32xbf16, #tpu.memory_space<vmem>>, vector<8x32xbf16>
      tpu.vector_store %arg5[%c0_13, %c0_14], %16 {strides = array<i32>} : memref<8x32xbf16, #tpu.memory_space<vmem>>, vector<8x32xbf16>,
    } else {
    }
    return
  }
  func.func @transform_0(%arg0: i32, %arg1: i32) -> (i32, i32) {
    %c0_i32 = arith.constant 0 : i32
    return %arg0, %arg1 : i32, i32
  }
  func.func @transform_1(%arg0: i32, %arg1: i32) -> (i32, i32) {
    %c0_i32 = arith.constant 0 : i32
    %c0_i32_0 = arith.constant 0 : i32
    return %arg1, %c0_i32 : i32, i32
  }
  func.func @transform_2(%arg0: i32, %arg1: i32) -> (i32, i32) {
    %c0_i32 = arith.constant 0 : i32
    %c0_i32_0 = arith.constant 0 : i32
    %c0_i32_1 = arith.constant 0 : i32
    return %c0_i32, %c0_i32_0 : i32, i32
  }
  func.func @transform_3(%arg0: i32, %arg1: i32) -> (i32, i32) {
    %c0_i32 = arith.constant 0 : i32
    %c0_i32_0 = arith.constant 0 : i32
    return %arg0, %c0_i32 : i32, i32
  }
}

</mosaic_0001>

<bundles_post_ra>
// kernel: tpu_custom_call.1
= control target key start
LH: loop header
LB: loop body
LE: loop exit
PB: predicated region body
PF: predicated region fallthrough
CT: control target
= control target key end

     0   :  { %8 = vsyncpa [#allocation4], 0  ;;  %s551_s12 = smov 0   ;;  %s553_s13 = smov 0   ;;  %s600_s0 = inlined_call_operand.vmem [shape: bf16[8,256], index: 0, kind: input, shape index: {}]   ;;  %s601_s1 = inlined_call_operand.vmem [shape: bf16[256,32], index: 1, kind: input, shape index: {}]   ;;  %s602_s2 = inlined_call_operand.vmem [shape: f32[1,32], index: 2, kind: input, shape index: {}]   ;;  %s603_s3 = inlined_call_operand.hbm [shape: bf16[8,32], index: 3, kind: output, shape index: {}]  }
   0x1   :  { %s555_s14 = smov 0  }
   0x2 LB: > { %s387_s15 = sadd.s32 4294967295, %s527_s14   ;;  %s23_s16 = sadd.s32 1, %s523_s13  ;;  %s527_s14 = sphi %s555_s14, %s14_s14   ;;  %s523_s13 = sphi %s553_s13, %s605_s13   ;;  %s519_s12 = sphi %s551_s12, %s604_s12  }
   0x3   : > { %p24_p0 = scmp.ge.s32.totalorder %s23_s16, 2  ;;  %p390_p1 = scmp.ge.s32.totalorder %s527_s14, 1 }
   0x4   : > { %p166_p2 = scmp.lt.s32.totalorder %s527_s14, 3 }
   0x5   : > { %s607_s16 = smov (%p24_p0, %s23_s16), 0 }
   0x6   : > { %p167_p3 = pnand %p390_p1, %p166_p2 }
   0x7   : > { %p195_p4 = scmp.lt.s32.totalorder (!%p167_p3), %s519_s12, 1  ;;  %s392_s17 = sshll.u32 (!%p167_p3), %s519_s12, 4 }
   0x8   : > { %170 = sbr.rel (%p167_p3) target bundleno = 200 (0xc8), region = 32  ;;  %p202_p5 = scmp.lt.s32.totalorder (!%p167_p3), %s392_s17, 31 }
   0x9   : > { %p394_p6 = scmp.ne.s32.totalorder (!%p167_p3), %s519_s12, 0 }
   0xd   : > { %s196_s18 = scalar_select %p195_p4, %s519_s12, 1 }
   0xe   : > { %s609_s17 = smov (!%p202_p5, %s392_s17), 31  ;;  %210 = sbr.rel (%p394_p6) target bundleno = 21 (0x15), region = 36 }
   0xf   : > { %s391_s19 = sshll.u32 %s196_s18, 2  ;;  %s393_s23 = sshll.u32 %s609_s17, 2 }
  0x10   : > { %s200_s22 = scalar_lea.vmem %s600_s0, %s391_s19  ;;  %s205_s26 = scalar_lea.vmem %s601_s1, %s393_s23 }
  0x13   : > { %vm211_vm0 = vcmask 261120   ;;  %v529_v0 = vmov 0.0  }
  0x14   : > { %212 = vst.msk [vmem:[#allocation2] sm:$0xff] %vm211_vm0, %v529_v0 }
  0x15 PF: > { %v439_v1 = vld [vmem:[%s205_s26 + $0x38] sm:$0xff]  ;;  %v438_v2 = vld [vmem:[%s205_s26 + $0x30] sm:$0xff]  ;;  %v437_v3 = vld [vmem:[%s205_s26 + $0x28] sm:$0xff]  ;;  %vm293_vm1 = vcmask 261120   ;;  %p427_p7 = scmp.ne.s32.totalorder %s519_s12, 1 }
  0x16   : > { %279 = vmatpush.bf16.msra.mxu0 %v439_v1  ;;  %v436_v4 = vld [vmem:[%s205_s26 + $0x20] sm:$0xff]  ;;  %v435_v5 = vld [vmem:[%s205_s26 + $0x18] sm:$0xff]  ;;  %v434_v6 = vld [vmem:[%s205_s26 + $0x10] sm:$0xff] }
  0x17   : > { %v433_v7 = vld [vmem:[%s205_s26 + $0x8] sm:$0xff]  ;;  %v432_v8 = vld [vmem:[%s205_s26] sm:$0xff] }
  0x18   : > { %v214_v9 = vld [vmem:[%s200_s22] sm:$0xf] }
  0x1a   : > { %280 = vmatpush.bf16.msra.mxu0 %v438_v2 }
  0x1b   : > { %v213_v10 = vld [vmem:[#allocation2] sm:$0xff] }
  0x1e   : > { %281 = vmatpush.bf16.msra.mxu0 %v437_v3 }
  0x22   : > { %282 = vmatpush.bf16.msra.mxu0 %v436_v4 }
  0x26   : > { %283 = vmatpush.bf16.msra.mxu0 %v435_v5 }
  0x2a   : > { %284 = vmatpush.bf16.msra.mxu0 %v434_v6 }
  0x2e   : > { %285 = vmatpush.bf16.msra.mxu0 %v433_v7 }
  0x32   : > { %286 = vmatpush.bf16.msra.mxu0 %v432_v8 }
  0x35   : > { %287 = vmatmul.bf16.vlgmr.msra.gmra.mxu0 %v214_v9 }
  0xb2   : > { %v288_v11 = vpop.f32.mrf.mxu0 }
  0xb3   : > { %v292_v12 = vadd.f32 %v288_v11, %v213_v10 }
  0xb5   : > { %294 = vst.msk [vmem:[#allocation2] sm:$0xff] %vm293_vm1, %v292_v12 }
  0xb6   : > { %298 = sbr.rel (%p427_p7) target bundleno = 194 (0xc2), region = 40 }
  0xba   : > { %v290_v13 = vpop.f32.mrf.mxu0 }
  0xbb   : > { %v472_v15 = vld [vmem:[%s602_s2] ss:$0 sm:$0xff]  ;;  %vm306_vm2 = vcmask 257024  }
  0xbc   : > { %v299_v14 = vld [vmem:[#allocation2] sm:$0xff] }
  0xbd   : > { %v304_v16 = vadd.f32 %v472_v15, %v299_v14 }
  0xbf   : > { %v305_v17 = vpack.c.bf16 %v304_v16, %v304_v16 }
  0xc1   : > { %307 = vst.msk [vmem:[#allocation3] sm:$0xf] %vm306_vm2, %v305_v17 }
  0xc2 PF: > { %p444_p8 = scmp.eq.s32.totalorder %s387_s15, 1  ;;  %s318_s4 = sshll.u32 %s603_s3, 4  ;;  %s319_s4 = int_to_ptr.hbm [resolvable:$true] %s318_s4 }
  0xc3   : > { %s530_s5 = smov [#allocation3]  }
  0xc4   : > { %s316_s6 = sshll.u32 %s530_s5, 4  ;;  %s317_s6 = int_to_ptr.vmem [resolvable:$true] %s316_s6 }
  0xc5   : > { %441 = dma.vmem_to_hbm [thread:$0]  (%p444_p8), %s317_s6, 64, %s319_s4, [#allocation4]  }
  0xc6   : > { %514 = dma.done.wait (%p444_p8), [#allocation4], 64  }
  0xc7   : > { %516 = vsyncadd (%p444_p8), [#allocation4], 4294967232 }
  0xc8 PF: > { %s14_s14 = sadd.s32 1, %s527_s14   ;;  %s604_s12 = smov %s523_s13 }
  0xc9   : > { %p11_p9 = scmp.ge.s32.totalorder %s14_s14, 4   ;;  %s605_s13 = smov %s607_s16 }
  0xcb   :  { %13 = sbr.rel (!%p11_p9) target bundleno = 2 (0x2), region = 71 }
  0xd0   :  { %332 = vsyncpa [#allocation4], 1 }
  0xd1   :  { %334 = vsyncpa [#allocation4 + $0x1], 1 }

</bundles_post_ra>
